<compile_context>
chip_gen: v7x
topology: tpu7x:2x2x1
jax: 0.10.0
libtpu: 0.0.40
codegen_flags: <defaults>
</compile_context>

<pallas_src>
import functools

import jax
import jax.numpy as jnp
from jax.experimental import pallas as pl
from jax.experimental.pallas import tpu as pltpu


# ----------------------------------------------------------------------------
# Chip / tiling helpers
# ----------------------------------------------------------------------------

_DEFAULT_SCOPED_VMEM = 32 << 20     # Mosaic's default scoped-VMEM limit


def _tpu_vmem_and_cores():
    """Returns (vmem_capacity_bytes, likely_two_tensorcores)."""
    cap = 64 << 20                   # conservative fallback (v7x-sized)
    try:
        info = pltpu.get_tpu_info()
        cap = int(getattr(info, "vmem_capacity_bytes", cap))
    except Exception:                # non-TPU backend / older jax: stay safe
        pass
    # 64-MiB-per-core VMEM => v7x-class chip with 2 TensorCores sharing HBM.
    return cap, cap <= (96 << 20)


def _pick_batch_tile(batch, per_batch_bytes, *, max_block_bytes, max_unroll=16,
                     prefer_even_steps=False):
    """Largest divisor of `batch` whose (tb, C, H*W) block fits the byte budget.

    max_unroll bounds the static per-batch unroll inside the kernel (keeps
    regalloc tight; the block size is bytes-bounded anyway).  On 2-TensorCore
    chips we prefer an even (>=2) number of grid steps so the "parallel" batch
    axis splits evenly across cores; on single-TC chips the grid is a serial
    loop, so fewer / bigger steps is strictly better.
    """
    cap = max(1, min(max_unroll, max_block_bytes // max(1, per_batch_bytes)))
    cap = min(cap, batch)
    divisors = [d for d in range(1, cap + 1) if batch % d == 0]
    tb = max(divisors)
    if prefer_even_steps and batch >= 2:
        even = [d for d in divisors if (batch // d) % 2 == 0]
        multi = [d for d in divisors if (batch // d) >= 2]
        if even:
            tb = max(even)
        elif multi:
            tb = max(multi)
    return tb


def _pick_channel_tile(channels, row_bytes, *, max_block_bytes, override=None):
    """Divisor of `channels` for the two-pass path ((1, tc, H*W) blocks)."""
    if override is not None:
        assert channels % override == 0
        return override
    cap = max(1, max_block_bytes // max(1, row_bytes))
    divisors = [d for d in range(1, min(cap, channels) + 1) if channels % d == 0]
    # Prefer a sublane-aligned tile (multiple of 8) or the full channel dim.
    good = [d for d in divisors if d % 8 == 0 or d == channels]
    return max(good) if good else max(divisors)


def _compiler_params(needed_bytes, budget_bytes, dims):
    kwargs = dict(dimension_semantics=dims)
    if needed_bytes > _DEFAULT_SCOPED_VMEM:
        # Raise the scoped limit only as far as needed, never past ~0.75x of
        # the chip's physical VMEM (fixes the old 100-MiB cap on v7x's 64 MiB).
        kwargs["vmem_limit_bytes"] = int(min(needed_bytes, budget_bytes))
    return pltpu.CompilerParams(**kwargs)


# ----------------------------------------------------------------------------
# Fused single-call path
# ----------------------------------------------------------------------------

def _se2d_temporal_kernel(x_ref, wsq_t_ref, bsq_ref, wex_t_ref, bex_ref, o_ref,
                          *, height, width, tb):
    """Temporal branch.  x_ref/o_ref: (tb, C, H*W) in x's native dtype."""
    C = x_ref.shape[1]
    inv_pool = 1.0 / float(C * height)

    wsq_t = wsq_t_ref[...]                     # (W, S)  f32
    bsq = bsq_ref[...]                         # (1, S)
    wex_t = wex_t_ref[...]                     # (S, W)
    bex = bex_ref[...]                         # (1, W)
    ones_row = jnp.ones((1, C), dtype=x_ref.dtype)

    # 1) Column-sum over C on the otherwise-idle MXU; f32 accumulation without
    #    materializing an f32 copy of the block.  tb is small and static.
    rows = [jnp.dot(ones_row, x_ref[b], preferred_element_type=jnp.float32)
            for b in range(tb)]                                 # tb x (1, H*W)
    colsum = rows[0] if tb == 1 else jnp.concatenate(rows, axis=0)  # (tb, H*W)

    # 2) Fold the H groups of width W with a log-depth tree of lane slices
    #    (review: the previous serial H-1 chain was a latency tail for big H).
    parts = [colsum[:, h * width:(h + 1) * width] for h in range(height)]
    while len(parts) > 1:
        nxt = [parts[i] + parts[i + 1] for i in range(0, len(parts) - 1, 2)]
        if len(parts) % 2:
            nxt.append(parts[-1])
        parts = nxt
    pooled = parts[0] * inv_pool                                # (tb, W) f32

    # 3) One batched gate MLP for all tb rows (2 matmuls instead of 2*tb).
    hid = jnp.maximum(
        jnp.dot(pooled, wsq_t, preferred_element_type=jnp.float32) + bsq, 0.0)
    gate = jax.nn.sigmoid(
        jnp.dot(hid, wex_t, preferred_element_type=jnp.float32) + bex)  # (tb, W)
    # Lane-dense index h*W+w of the H*W axis gets gate[w].
    gate_hw = jnp.tile(gate, (1, height)).astype(x_ref.dtype)   # (tb, H*W)

    # 4) Apply in native dtype; (1, H*W) broadcasts over the C sublanes.
    for b in range(tb):
        o_ref[b] = x_ref[b] * gate_hw[b:b + 1, :]


def _se2d_channel_kernel(x_ref, wsq_ref, bsq_ref, wex_ref, bex_ref, o_ref, *, tb):
    """Channel branch.  Column-oriented so the gate broadcasts along lanes."""
    wsq = wsq_ref[...]                         # (S, C)  f32
    bsq = bsq_ref[...]                         # (S, 1)
    wex = wex_ref[...]                         # (C, S)
    bex = bex_ref[...]                         # (C, 1)

    cols = [jnp.max(x_ref[b], axis=1, keepdims=True).astype(jnp.float32)
            for b in range(tb)]                                 # tb x (C, 1)
    pooled = cols[0] if tb == 1 else jnp.concatenate(cols, axis=1)  # (C, tb)

    # Batched gate MLP for all tb columns (2 matmuls instead of 2*tb matvecs).
    hid = jnp.maximum(
        jnp.dot(wsq, pooled, preferred_element_type=jnp.float32) + bsq, 0.0)
    gate = jax.nn.sigmoid(
        jnp.dot(wex, hid, preferred_element_type=jnp.float32) + bex)    # (C, tb)
    gate = gate.astype(x_ref.dtype)

    for b in range(tb):
        o_ref[b] = x_ref[b] * gate[:, b:b + 1]     # (C,1) broadcasts along lanes


def _fused_call(x_r, w_sq, b_sq, w_ex, b_ex, temporal, height, width,
                avail, budget, two_tc, donate_x):
    B, C, hw = x_r.shape
    itemsize = x_r.dtype.itemsize
    per_batch_bytes = C * hw * itemsize
    L = width if temporal else C
    S = w_sq.shape[0]

    # HBM-bound: bigger blocks amortize the ~0.35us/step grid overhead.  Target
    # ~12 MiB/step on 128-MiB-VMEM chips, ~6 MiB on 64-MiB chips, bounded by
    # what actually fits with double-buffered in+out.
    target_block = (6 << 20) if two_tc else (12 << 20)
    max_block = min(target_block, max(per_batch_bytes, avail // 4))
    tb = _pick_batch_tile(B, per_batch_bytes, max_block_bytes=max_block,
                          prefer_even_steps=two_tc)
    grid = (B // tb,)
    block_bytes = tb * per_batch_bytes

    # TODO(synk): for H*W < 128, flatten blocks to (tb, C*H*W) to keep stores
    # lane-dense (the temporal gate repeats with period W so tiling still works).
    x_spec = pl.BlockSpec((tb, C, hw), lambda i: (i, 0, 0))
    out_spec = pl.BlockSpec((tb, C, hw), lambda i: (i, 0, 0))

    if temporal:
        params = (
            jnp.asarray(w_sq, jnp.float32).T,               # (W, S)
            jnp.asarray(b_sq, jnp.float32).reshape(1, S),   # (1, S)
            jnp.asarray(w_ex, jnp.float32).T,               # (S, W)
            jnp.asarray(b_ex, jnp.float32).reshape(1, W if temporal else C),
        )
        kernel = functools.partial(_se2d_temporal_kernel,
                                   height=height, width=width, tb=tb)
    else:
        params = (
            jnp.asarray(w_sq, jnp.float32),                 # (S, C)
            jnp.asarray(b_sq, jnp.float32).reshape(S, 1),   # (S, 1)
            jnp.asarray(w_ex, jnp.float32),                 # (C, S)
            jnp.asarray(b_ex, jnp.float32).reshape(C, 1),   # (C, 1)
        )
        kernel = functools.partial(_se2d_channel_kernel, tb=tb)

    # TODO(synk): mark param specs pipeline_mode=pl.Buffered(1) (constant
    # index_map) to reclaim the duplicate buffer on VMEM-tight chips.
    param_specs = [pl.BlockSpec(p.shape, lambda i: (0, 0)) for p in params]
    param_bytes = 2 * sum(int(p.size) * 4 for p in params)   # double-buffered

    cost = pl.CostEstimate(
        flops=int(3 * B * C * hw + 4 * B * L * S),
        transcendentals=int(B * L),                           # sigmoid
        bytes_accessed=int(2 * B * C * hw * itemsize + param_bytes // 2))

    # 2 input + 2 output buffers per step (double-buffered) + params + margin.
    needed = 4 * block_bytes + param_bytes + (2 << 20)

    return pl.pallas_call(
        kernel,
        out_shape=jax.ShapeDtypeStruct((B, C, hw), x_r.dtype),
        grid_spec=pltpu.PrefetchScalarGridSpec(
            num_scalar_prefetch=0,
            grid=grid,
            in_specs=[x_spec] + param_specs,
            out_specs=out_spec),
        compiler_params=_compiler_params(needed, budget, ("parallel",)),
        cost_estimate=cost,
        input_output_aliases={0: 0} if donate_x else {},
    )(x_r, *params)


# ----------------------------------------------------------------------------
# Two-pass fallback (large activations / B == 1): C-tiled pool + C-tiled apply
# ----------------------------------------------------------------------------

def _pool_sum_kernel(x_ref, o_ref):
    """Accumulate the sum over C.  x_ref: (1, tc, H*W); o_ref: (1, 1, H*W) f32."""
    @pl.when(pl.program_id(1) == 0)
    def _():
        o_ref[...] = jnp.zeros_like(o_ref)
    tc = x_ref.shape[1]
    ones_row = jnp.ones((1, tc), dtype=x_ref.dtype)
    o_ref[0] = o_ref[0] + jnp.dot(ones_row, x_ref[0],
                                  preferred_element_type=jnp.float32)


def _pool_max_kernel(x_ref, o_ref):
    """Per-channel max over the spatial axis.  o_ref: (1, tc, 1) f32."""
    o_ref[...] = jnp.max(x_ref[...], axis=2, keepdims=True).astype(jnp.float32)


def _apply_gate_kernel(x_ref, g_ref, o_ref):
    """out = x * gate; gate is (1,1,H*W) (temporal) or (1,tc,1) (channel)."""
    o_ref[...] = x_ref[...] * g_ref[...]


def _gate_mlp(pooled, w_sq, b_sq, w_ex, b_ex):
    """Tiny (B, L) gate MLP in f32 (wrapper-side glue for the two-pass path)."""
    hid = jnp.maximum(
        pooled @ jnp.asarray(w_sq, jnp.float32).T + jnp.asarray(b_sq, jnp.float32),
        0.0)
    return jax.nn.sigmoid(
        hid @ jnp.asarray(w_ex, jnp.float32).T + jnp.asarray(b_ex, jnp.float32))


def _two_pass_call(x_r, w_sq, b_sq, w_ex, b_ex, temporal, height, width,
                   budget, margin, channel_tile, donate_x):
    B, C, hw = x_r.shape
    itemsize = x_r.dtype.itemsize
    row_bytes = hw * itemsize

    # TODO(synk): also tile the H*W axis when even a single (1, H*W) row is too
    # large for VMEM (needs masked max / width-aligned spatial tiles).
    avail = budget - margin
    tc = _pick_channel_tile(C, row_bytes,
                            max_block_bytes=max(row_bytes, avail // 4),
                            override=channel_tile)
    n_c = C // tc
    block_bytes = tc * row_bytes

    x_spec = pl.BlockSpec((1, tc, hw), lambda b, j: (b, j, 0))

    # ---- pass 1: pooled statistics -----------------------------------------
    if temporal:
        pool_needed = 2 * block_bytes + 2 * hw * 4 + margin
        colsum = pl.pallas_call(
            _pool_sum_kernel,
            out_shape=jax.ShapeDtypeStruct((B, 1, hw), jnp.float32),
            grid_spec=pltpu.PrefetchScalarGridSpec(
                num_scalar_prefetch=0, grid=(B, n_c),
                in_specs=[x_spec],
                out_specs=pl.BlockSpec((1, 1, hw), lambda b, j: (b, 0, 0))),
            compiler_params=_compiler_params(pool_needed, budget,
                                             ("parallel", "arbitrary")),
        )(x_r)
        pooled = colsum.reshape(B, height, width).sum(axis=1) / float(C * height)
        gate = _gate_mlp(pooled, w_sq, b_sq, w_ex, b_ex)              # (B, W)
        gate_full = jnp.tile(gate, (1, height)).reshape(B, 1, hw).astype(x_r.dtype)
        g_spec = pl.BlockSpec((1, 1, hw), lambda b, j: (b, 0, 0))
    else:
        pool_needed = 2 * block_bytes + 2 * tc * 4 + margin
        pooled = pl.pallas_call(
            _pool_max_kernel,
            out_shape=jax.ShapeDtypeStruct((B, C, 1), jnp.float32),
            grid_spec=pltpu.PrefetchScalarGridSpec(
                num_scalar_prefetch=0, grid=(B, n_c),
                in_specs=[x_spec],
                out_specs=pl.BlockSpec((1, tc, 1), lambda b, j: (b, j, 0))),
            compiler_params=_compiler_params(pool_needed, budget,
                                             ("parallel", "parallel")),
        )(x_r)
        gate = _gate_mlp(pooled[..., 0], w_sq, b_sq, w_ex, b_ex)      # (B, C)
        gate_full = gate.reshape(B, C, 1).astype(x_r.dtype)
        g_spec = pl.BlockSpec((1, tc, 1), lambda b, j: (b, j, 0))

    # ---- pass 2: out = x * gate ---------------------------------------------
    apply_needed = 4 * block_bytes + 2 * int(gate_full.size) * itemsize + margin
    cost = pl.CostEstimate(
        flops=int(B * C * hw), transcendentals=0,
        bytes_accessed=int(2 * B * C * hw * itemsize))
    return pl.pallas_call(
        _apply_gate_kernel,
        out_shape=jax.ShapeDtypeStruct((B, C, hw), x_r.dtype),
        grid_spec=pltpu.PrefetchScalarGridSpec(
            num_scalar_prefetch=0, grid=(B, n_c),
            in_specs=[x_spec, g_spec],
            out_specs=pl.BlockSpec((1, tc, hw), lambda b, j: (b, j, 0))),
        compiler_params=_compiler_params(apply_needed, budget,
                                         ("parallel", "parallel")),
        cost_estimate=cost,
        input_output_aliases={0: 0} if donate_x else {},
    )(x_r, gate_full)


# ----------------------------------------------------------------------------
# Public wrapper
# ----------------------------------------------------------------------------

def squeeze_expand_2d(x, w_sq, b_sq, w_ex, b_ex, *, temporal=True,
                      donate_x=False, force_two_pass=False, channel_tile=None):
    """x: (B, C, H, W).  nn.Linear layout: w_sq: (S, L), b_sq: (S,),
    w_ex: (L, S), b_ex: (L,), with L == W (temporal) or L == C (channel).

    donate_x       : alias x's buffer onto the output (caller must donate x).
    force_two_pass : testing hook -- force the large-activation fallback path.
    channel_tile   : testing hook -- channel tile size for the fallback path.
    """
    B, C, H, W = x.shape
    L = W if temporal else C
    S = w_sq.shape[0]
    assert w_sq.shape == (S, L) and w_ex.shape == (L, S)
    assert b_sq.shape == (S,) and b_ex.shape == (L,)

    hw = H * W
    itemsize = x.dtype.itemsize
    x_r = x.reshape(B, C, hw)            # lane-dense layout, free wrapper-side
    per_batch_bytes = C * hw * itemsize

    vmem_cap, two_tc = _tpu_vmem_and_cores()
    budget = int(0.75 * vmem_cap)        # headroom for compiler scratch
    margin = 2 << 20
    param_bytes = 2 * 4 * (2 * L * S + L + S)   # f32, double-buffered
    avail = budget - param_bytes - margin

    use_two_pass = force_two_pass or (4 * per_batch_bytes > avail)
    if not use_two_pass:
        out_r = _fused_call(x_r, w_sq, b_sq, w_ex, b_ex, temporal, H, W,
                            avail, budget, two_tc, donate_x)
    else:
        out_r = _two_pass_call(x_r, w_sq, b_sq, w_ex, b_ex, temporal, H, W,
                               budget, margin, channel_tile, donate_x)
    return out_r.reshape(B, C, H, W)


def _reference(x, w_sq, b_sq, w_ex, b_ex, temporal=True):
    """Pure-JAX reference matching the PyTorch forward exactly."""
    if temporal:
        pooled = jnp.mean(x, axis=(1, 2))                     # (B, W)
    else:
        pooled = jnp.max(x, axis=(2, 3))                      # (B, C)
    gate = jax.nn.sigmoid(
        jnp.maximum(pooled @ w_sq.T + b_sq, 0.0) @ w_ex.T + b_ex)
    if temporal:
        return gate[:, None, None, :] * x                     # (B,1,1,W) * x
    return gate[:, :, None, None] * x                         # (B,C,1,1) * x


if __name__ == "__main__":
    key = jax.random.PRNGKey(0)
    keys = jax.random.split(key, 18)

    # ---- fused path: batch=2, channels=4, spatial=16x16, squeeze_dim=8 ------
    B, C, H, W = 2, 4, 16, 16
    S = 8
    x = jax.random.normal(keys[0], (B, C, H, W), dtype=jnp.float32)

    # Temporal branch (module default, TemporalBranch=True): input_length == W.
    w_sq_t = 0.1 * jax.random.normal(keys[1], (S, W), jnp.float32)
    b_sq_t = 0.1 * jax.random.normal(keys[2], (S,), jnp.float32)
    w_ex_t = 0.1 * jax.random.normal(keys[3], (W, S), jnp.float32)
    b_ex_t = 0.1 * jax.random.normal(keys[4], (W,), jnp.float32)
    out_t = jax.block_until_ready(
        squeeze_expand_2d(x, w_sq_t, b_sq_t, w_ex_t, b_ex_t, temporal=True))
    ref_t = _reference(x, w_sq_t, b_sq_t, w_ex_t, b_ex_t, temporal=True)
    assert out_t.shape == (B, C, H, W)
    assert jnp.allclose(out_t, ref_t, atol=1e-4, rtol=1e-4)

    # Channel branch (TemporalBranch=False): input_length == C.
    w_sq_c = 0.1 * jax.random.normal(keys[5], (S, C), jnp.float32)
    b_sq_c = 0.1 * jax.random.normal(keys[6], (S,), jnp.float32)
    w_ex_c = 0.1 * jax.random.normal(keys[7], (C, S), jnp.float32)
    b_ex_c = 0.1 * jax.random.normal(keys[8], (C,), jnp.float32)
    out_c = jax.block_until_ready(
        squeeze_expand_2d(x, w_sq_c, b_sq_c, w_ex_c, b_ex_c, temporal=False))
    ref_c = _reference(x, w_sq_c, b_sq_c, w_ex_c, b_ex_c, temporal=False)
    assert out_c.shape == (B, C, H, W)
    assert jnp.allclose(out_c, ref_c, atol=1e-4, rtol=1e-4)

    # ---- two-pass fallback path, exercised at small shapes (C tiled by 8) ---
    B2, C2, H2, W2, S2 = 1, 16, 8, 8, 4
    x2 = jax.random.normal(keys[9], (B2, C2, H2, W2), dtype=jnp.float32)

    w_sq_t2 = 0.1 * jax.random.normal(keys[10], (S2, W2), jnp.float32)
    b_sq_t2 = 0.1 * jax.random.normal(keys[11], (S2,), jnp.float32)
    w_ex_t2 = 0.1 * jax.random.normal(keys[12], (W2, S2), jnp.float32)
    b_ex_t2 = 0.1 * jax.random.normal(keys[13], (W2,), jnp.float32)
    out_t2 = jax.block_until_ready(
        squeeze_expand_2d(x2, w_sq_t2, b_sq_t2, w_ex_t2, b_ex_t2, temporal=True,
                          force_two_pass=True, channel_tile=8))
    ref_t2 = _reference(x2, w_sq_t2, b_sq_t2, w_ex_t2, b_ex_t2, temporal=True)
    assert jnp.allclose(out_t2, ref_t2, atol=1e-4, rtol=1e-4)

    w_sq_c2 = 0.1 * jax.random.normal(keys[14], (S2, C2), jnp.float32)
    b_sq_c2 = 0.1 * jax.random.normal(keys[15], (S2,), jnp.float32)
    w_ex_c2 = 0.1 * jax.random.normal(keys[16], (C2, S2), jnp.float32)
    b_ex_c2 = 0.1 * jax.random.normal(keys[17], (C2,), jnp.float32)
    out_c2 = jax.block_until_ready(
        squeeze_expand_2d(x2, w_sq_c2, b_sq_c2, w_ex_c2, b_ex_c2, temporal=False,
                          force_two_pass=True, channel_tile=8))
    ref_c2 = _reference(x2, w_sq_c2, b_sq_c2, w_ex_c2, b_ex_c2, temporal=False)
    assert jnp.allclose(out_c2, ref_c2, atol=1e-4, rtol=1e-4)

    print("KERNEL_OK")
</pallas_src>

<mosaic_0001>
module attributes {stable_mosaic.version = 11 : i64} {
  func.func @_se2d_temporal_kernel(%arg0: i32, %arg1: memref<1x4x256xf32, #tpu.memory_space<vmem>>, %arg2: memref<16x8xf32, #tpu.memory_space<vmem>>, %arg3: memref<1x8xf32, #tpu.memory_space<vmem>>, %arg4: memref<8x16xf32, #tpu.memory_space<vmem>>, %arg5: memref<1x16xf32, #tpu.memory_space<vmem>>, %arg6: memref<1x4x256xf32, #tpu.memory_space<vmem>>) attributes {dimension_semantics = [#tpu.dimension_semantics<parallel>], iteration_bounds = array<i64: 2>, scalar_prefetch = 0 : i64, scratch_operands = 0 : i64, tpu.core_type = #tpu.core_type<tc>, window_params = [{transform_indices = @transform_0, window_bounds = array<i64: 1, 4, 256>}, {pipeline_mode = #tpu.pipeline_mode<synchronous>, transform_indices = @transform_1, window_bounds = array<i64: 16, 8>}, {pipeline_mode = #tpu.pipeline_mode<synchronous>, transform_indices = @transform_2, window_bounds = array<i64: 1, 8>}, {pipeline_mode = #tpu.pipeline_mode<synchronous>, transform_indices = @transform_3, window_bounds = array<i64: 8, 16>}, {pipeline_mode = #tpu.pipeline_mode<synchronous>, transform_indices = @transform_4, window_bounds = array<i64: 1, 16>}, {transform_indices = @transform_5, window_bounds = array<i64: 1, 4, 256>}]} {
    %c0 = arith.constant 0 : index
    %c0_0 = arith.constant 0 : index
    %0 = vector.load %arg2[%c0, %c0_0] : memref<16x8xf32, #tpu.memory_space<vmem>>, vector<16x8xf32>
    %c0_1 = arith.constant 0 : index
    %c0_2 = arith.constant 0 : index
    %1 = vector.load %arg3[%c0_1, %c0_2] : memref<1x8xf32, #tpu.memory_space<vmem>>, vector<1x8xf32>
    %c0_3 = arith.constant 0 : index
    %c0_4 = arith.constant 0 : index
    %2 = vector.load %arg4[%c0_3, %c0_4] : memref<8x16xf32, #tpu.memory_space<vmem>>, vector<8x16xf32>
    %c0_5 = arith.constant 0 : index
    %c0_6 = arith.constant 0 : index
    %3 = vector.load %arg5[%c0_5, %c0_6] : memref<1x16xf32, #tpu.memory_space<vmem>>, vector<1x16xf32>
    %cst = arith.constant 1.000000e+00 : f32
    %4 = vector.broadcast %cst : f32 to vector<1x4xf32>
    %c0_7 = arith.constant 0 : index
    %c0_8 = arith.constant 0 : index
    %c0_9 = arith.constant 0 : index
    %5 = vector.load %arg1[%c0_7, %c0_8, %c0_9] : memref<1x4x256xf32, #tpu.memory_space<vmem>>, vector<1x4x256xf32>
    %6 = vector.shape_cast %5 : vector<1x4x256xf32> to vector<4x256xf32>
    %cst_10 = arith.constant dense<0.000000e+00> : vector<1x256xf32>
    %7 = tpu.matmul %4, %6, %cst_10 {dimension_numbers = #tpu.dot_dimension_numbers<[1], [0], [0], [1], [0, 0, 1, 1], [], []>} : vector<1x4xf32>, vector<4x256xf32>, vector<1x256xf32> -> vector<1x256xf32>
    %8 = vector.extract_strided_slice %7 {offsets = [0, 0], sizes = [1, 16], strides = [1, 1]} : vector<1x256xf32> to vector<1x16xf32>
    %9 = vector.extract_strided_slice %7 {offsets = [0, 16], sizes = [1, 16], strides = [1, 1]} : vector<1x256xf32> to vector<1x16xf32>
    %10 = vector.extract_strided_slice %7 {offsets = [0, 32], sizes = [1, 16], strides = [1, 1]} : vector<1x256xf32> to vector<1x16xf32>
    %11 = vector.extract_strided_slice %7 {offsets = [0, 48], sizes = [1, 16], strides = [1, 1]} : vector<1x256xf32> to vector<1x16xf32>
    %12 = vector.extract_strided_slice %7 {offsets = [0, 64], sizes = [1, 16], strides = [1, 1]} : vector<1x256xf32> to vector<1x16xf32>
    %13 = vector.extract_strided_slice %7 {offsets = [0, 80], sizes = [1, 16], strides = [1, 1]} : vector<1x256xf32> to vector<1x16xf32>
    %14 = vector.extract_strided_slice %7 {offsets = [0, 96], sizes = [1, 16], strides = [1, 1]} : vector<1x256xf32> to vector<1x16xf32>
    %15 = vector.extract_strided_slice %7 {offsets = [0, 112], sizes = [1, 16], strides = [1, 1]} : vector<1x256xf32> to vector<1x16xf32>
    %16 = vector.extract_strided_slice %7 {offsets = [0, 128], sizes = [1, 16], strides = [1, 1]} : vector<1x256xf32> to vector<1x16xf32>
    %17 = vector.extract_strided_slice %7 {offsets = [0, 144], sizes = [1, 16], strides = [1, 1]} : vector<1x256xf32> to vector<1x16xf32>
    %18 = vector.extract_strided_slice %7 {offsets = [0, 160], sizes = [1, 16], strides = [1, 1]} : vector<1x256xf32> to vector<1x16xf32>
    %19 = vector.extract_strided_slice %7 {offsets = [0, 176], sizes = [1, 16], strides = [1, 1]} : vector<1x256xf32> to vector<1x16xf32>
    %20 = vector.extract_strided_slice %7 {offsets = [0, 192], sizes = [1, 16], strides = [1, 1]} : vector<1x256xf32> to vector<1x16xf32>
    %21 = vector.extract_strided_slice %7 {offsets = [0, 208], sizes = [1, 16], strides = [1, 1]} : vector<1x256xf32> to vector<1x16xf32>
    %22 = vector.extract_strided_slice %7 {offsets = [0, 224], sizes = [1, 16], strides = [1, 1]} : vector<1x256xf32> to vector<1x16xf32>
    %23 = vector.extract_strided_slice %7 {offsets = [0, 240], sizes = [1, 16], strides = [1, 1]} : vector<1x256xf32> to vector<1x16xf32>
    %24 = arith.addf %8, %9 : vector<1x16xf32>
    %25 = arith.addf %10, %11 : vector<1x16xf32>
    %26 = arith.addf %12, %13 : vector<1x16xf32>
    %27 = arith.addf %14, %15 : vector<1x16xf32>
    %28 = arith.addf %16, %17 : vector<1x16xf32>
    %29 = arith.addf %18, %19 : vector<1x16xf32>
    %30 = arith.addf %20, %21 : vector<1x16xf32>
    %31 = arith.addf %22, %23 : vector<1x16xf32>
    %32 = arith.addf %24, %25 : vector<1x16xf32>
    %33 = arith.addf %26, %27 : vector<1x16xf32>
    %34 = arith.addf %28, %29 : vector<1x16xf32>
    %35 = arith.addf %30, %31 : vector<1x16xf32>
    %36 = arith.addf %32, %33 : vector<1x16xf32>
    %37 = arith.addf %34, %35 : vector<1x16xf32>
    %38 = arith.addf %36, %37 : vector<1x16xf32>
    %cst_11 = arith.constant 1.562500e-02 : f32
    %39 = vector.broadcast %cst_11 : f32 to vector<1x16xf32>
    %40 = arith.mulf %38, %39 : vector<1x16xf32>
    %cst_12 = arith.constant dense<0.000000e+00> : vector<1x8xf32>
    %41 = tpu.matmul %40, %0, %cst_12 {dimension_numbers = #tpu.dot_dimension_numbers<[1], [0], [0], [1], [0, 0, 1, 1], [], []>} : vector<1x16xf32>, vector<16x8xf32>, vector<1x8xf32> -> vector<1x8xf32>
    %42 = arith.addf %41, %1 : vector<1x8xf32>
    %cst_13 = arith.constant 0.000000e+00 : f32
    %43 = vector.broadcast %cst_13 : f32 to vector<1x8xf32>
    %44 = arith.maximumf %42, %43 : vector<1x8xf32>
    %cst_14 = arith.constant dense<0.000000e+00> : vector<1x16xf32>
    %45 = tpu.matmul %44, %2, %cst_14 {dimension_numbers = #tpu.dot_dimension_numbers<[1], [0], [0], [1], [0, 0, 1, 1], [], []>} : vector<1x8xf32>, vector<8x16xf32>, vector<1x16xf32> -> vector<1x16xf32>
    %46 = arith.addf %45, %3 : vector<1x16xf32>
    %47 = arith.negf %46 : vector<1x16xf32>
    %48 = math.exp %47 : vector<1x16xf32>
    %cst_15 = arith.constant 1.000000e+00 : f32
    %49 = vector.broadcast %cst_15 : f32 to vector<1x16xf32>
    %50 = arith.addf %49, %48 : vector<1x16xf32>
    %51 = arith.divf %49, %50 : vector<1x16xf32>
    %52 = tpu.concatenate %51, %51, %51, %51, %51, %51, %51, %51, %51, %51, %51, %51, %51, %51, %51, %51 in 1 : vector<1x16xf32>, vector<1x16xf32>, vector<1x16xf32>, vector<1x16xf32>, vector<1x16xf32>, vector<1x16xf32>, vector<1x16xf32>, vector<1x16xf32>, vector<1x16xf32>, vector<1x16xf32>, vector<1x16xf32>, vector<1x16xf32>, vector<1x16xf32>, vector<1x16xf32>, vector<1x16xf32>, vector<1x16xf32> -> vector<1x256xf32>
    %c0_16 = arith.constant 0 : index
    %c0_17 = arith.constant 0 : index
    %c0_18 = arith.constant 0 : index
    %53 = vector.load %arg1[%c0_16, %c0_17, %c0_18] : memref<1x4x256xf32, #tpu.memory_space<vmem>>, vector<1x4x256xf32>
    %54 = vector.shape_cast %53 : vector<1x4x256xf32> to vector<4x256xf32>
    %55 = vector.broadcast %52 : vector<1x256xf32> to vector<4x256xf32>
    %56 = arith.mulf %54, %55 : vector<4x256xf32>
    %c0_19 = arith.constant 0 : index
    %c0_20 = arith.constant 0 : index
    %c0_21 = arith.constant 0 : index
    %57 = vector.load %arg6[%c0_19, %c0_20, %c0_21] : memref<1x4x256xf32, #tpu.memory_space<vmem>>, vector<1x4x256xf32>
    %58 = vector.shape_cast %57 : vector<1x4x256xf32> to vector<4x256xf32>
    %59 = vector.shape_cast %56 : vector<4x256xf32> to vector<1x4x256xf32>
    tpu.vector_store %arg6[%c0_19, %c0_20, %c0_21], %59 {strides = array<i32>} : memref<1x4x256xf32, #tpu.memory_space<vmem>>, vector<1x4x256xf32>,
    return
  }
  func.func @transform_0(%arg0: i32) -> (i32, i32, i32) {
    %c0_i32 = arith.constant 0 : i32
    %c0_i32_0 = arith.constant 0 : i32
    %c0_i32_1 = arith.constant 0 : i32
    return %arg0, %c0_i32, %c0_i32_0 : i32, i32, i32
  }
  func.func @transform_1(%arg0: i32) -> (i32, i32) {
    %c0_i32 = arith.constant 0 : i32
    %c0_i32_0 = arith.constant 0 : i32
    %c0_i32_1 = arith.constant 0 : i32
    return %c0_i32, %c0_i32_0 : i32, i32
  }
  func.func @transform_2(%arg0: i32) -> (i32, i32) {
    %c0_i32 = arith.constant 0 : i32
    %c0_i32_0 = arith.constant 0 : i32
    %c0_i32_1 = arith.constant 0 : i32
    return %c0_i32, %c0_i32_0 : i32, i32
  }
  func.func @transform_3(%arg0: i32) -> (i32, i32) {
    %c0_i32 = arith.constant 0 : i32
    %c0_i32_0 = arith.constant 0 : i32
    %c0_i32_1 = arith.constant 0 : i32
    return %c0_i32, %c0_i32_0 : i32, i32
  }
  func.func @transform_4(%arg0: i32) -> (i32, i32) {
    %c0_i32 = arith.constant 0 : i32
    %c0_i32_0 = arith.constant 0 : i32
    %c0_i32_1 = arith.constant 0 : i32
    return %c0_i32, %c0_i32_0 : i32, i32
  }
  func.func @transform_5(%arg0: i32) -> (i32, i32, i32) {
    %c0_i32 = arith.constant 0 : i32
    %c0_i32_0 = arith.constant 0 : i32
    %c0_i32_1 = arith.constant 0 : i32
    return %arg0, %c0_i32, %c0_i32_0 : i32, i32, i32
  }
}

</mosaic_0001>

<bundles_post_ra>
// kernel: tpu_custom_call.1
= control target key start
LH: loop header
LB: loop body
LE: loop exit
PB: predicated region body
PF: predicated region fallthrough
CT: control target
= control target key end

     0   :  { %10 = vsyncpa [#allocation3], 0  ;;  %s949_s0 = inlined_call_operand.vmem [shape: f32[2,4,256], index: 0, kind: input, shape index: {}]   ;;  %s950_s1 = inlined_call_operand.vmem [shape: f32[16,8], index: 1, kind: input, shape index: {}]   ;;  %s951_s2 = inlined_call_operand.vmem [shape: f32[1,8], index: 2, kind: input, shape index: {}]   ;;  %s952_s3 = inlined_call_operand.vmem [shape: f32[8,16], index: 3, kind: input, shape index: {}]   ;;  %s953_s4 = inlined_call_operand.vmem [shape: f32[1,16], index: 4, kind: input, shape index: {}]   ;;  %s954_s5 = inlined_call_operand.hbm [shape: f32[2,4,256], index: 5, kind: output, shape index: {}]  }
   0x1   :  { %12 = vsyncpa [#allocation3 + $0x1], 0  ;;  %s817_s18 = smov 0   ;;  %s819_s19 = smov 0  }
   0x2   :  { %s821_s20 = smov 0   ;;  %s823_s21 = smov 0  }
   0x3 LB: > { %s838_s22 = sadd.s32 4294967295, %s773_s21   ;;  %s616_s23 = sadd.s32 4294967294, %s773_s21   ;;  %s773_s21 = sphi %s823_s21, %s960_s21   ;;  %s769_s20 = sphi %s821_s20, %s959_s20   ;;  %s765_s19 = sphi %s819_s19, %s958_s19   ;;  %s761_s18 = sphi %s817_s18, %s957_s18  }
   0x4   : > { %s842_s24 = sadd.s32 1, %s773_s21   ;;  %s135_s25 = sadd.s32 1, %s769_s20 }
   0x5   : > { %s132_s26 = ssub.s32 %s773_s21, %s842_s24  ;;  %p145_p0 = scmp.ne.s32.totalorder %s769_s20, %s765_s19 }
   0x6   : > { %p133_p1 = scmp.eq.s32.totalorder %s132_s26, 0  ;;  %p146_p2 = scmp.eq.s32.totalorder %s838_s22, 1 }
   0x7   : > { %p151_p3 = scmp.ne.s32.totalorder %s765_s19, %s761_s18  ;;  %p152_p4 = scmp.eq.s32.totalorder %s616_s23, 1 }
   0x8   : > { %s853_s27 = scalar_select %p133_p1, %s769_s20, %s135_s25  }
   0x9   : > { %p855_p5 = por %p146_p2, %p145_p0  ;;  %p859_p6 = por %p152_p4, %p151_p3 }
   0xa   : > { %p619_p7 = scmp.ge.s32.totalorder %s773_s21, 1  ;;  %p190_p8 = scmp.lt.s32.totalorder %s773_s21, 3 }
   0xc   : > { %p191_p9 = pnand %p619_p7, %p190_p8 }
   0xd   : > { %p218_p10 = scmp.lt.s32.totalorder (!%p191_p9), %s838_s22, 1  ;;  %v775_v0 = vmov (!%p191_p9), 0.0   ;;  %vm235_vm0 = vcmask (!%p191_p9), 1043456   ;;  %vm231_vm1 = vcmask (!%p191_p9), 31744   ;;  %v776_v3 = vmov (!%p191_p9), 1.0   ;;  %s777_s10 = smov (!%p191_p9), 112  }
   0xe   : > { %194 = sbr.rel (%p191_p9) target bundleno = 1205 (0x4b5), region = 40  ;;  %304 = vmatprep.mubr.f32.mxu0 (!%p191_p9), %v775_v0  ;;  %s778_s11 = smov (!%p191_p9), 96   ;;  %v223_v10 = vld [vmem:[%s950_s1] sm:$0xff] (!%p191_p9)  ;;  %v224_v11 = vld [vmem:[%s950_s1 + $0x8] sm:$0xff] (!%p191_p9)  ;;  %v779_v13 = vmov (!%p191_p9), 0.0|0.0   ;;  %vm780_vm2 = vmmov (!%p191_p9), 0   ;;  %v533_v41 = vlaneseq (!%p191_p9) }
   0xf   : > { %v654_v12 = vpack.c.bf16 (!%p191_p9), %v224_v11, %v223_v10  ;;  %653 = vmatprep.subr.bf16.mxu1 (!%p191_p9), %v779_v13  ;;  %645 = vmatprep.mubr.msk.f32.mxu1 (!%p191_p9), %vm780_vm2, %v775_v0  ;;  %s781_s16 = smov (!%p191_p9), 64   ;;  %vm343_vm3 = vcmask (!%p191_p9), 130048   ;;  %v226_v24 = vld [vmem:[%s952_s3] sm:$0xff] (!%p191_p9)  ;;  %vm418_vm4 = vcmask (!%p191_p9), 64512   ;;  %s782_s7 = smov (!%p191_p9), 32   ;;  %vm521_vm5 = vcmask (!%p191_p9), 261120  }
  0x10   : > { %v225_v25 = vld [vmem:[%s951_s2] sm:$0x1] (!%p191_p9)  ;;  %s783_s8 = smov (!%p191_p9), 16   ;;  %s785_s12 = smov (!%p191_p9), 80   ;;  %vm523_vm6 = vcmask (!%p191_p9), 392192   ;;  %vm525_vm7 = vcmask (!%p191_p9), 523264  }
  0x11   : > { %655 = vmatpush3.bf16.msra.mxu1 (!%p191_p9), %v654_v12  ;;  %v227_v30 = vld [vmem:[%s953_s4] sm:$0x1] (!%p191_p9)  ;;  %vm527_vm8 = vcmask (!%p191_p9), 654336   ;;  %v534_v46 = vshrl.u32 (!%p191_p9), %v533_v41, 7  ;;  %vm529_vm9 = vcmask (!%p191_p9), 785408   ;;  %vm531_vm10 = vcmask (!%p191_p9), 916480  }
  0x12   : > { %s635_s13 = sshll.u32 (!%p191_p9), %s838_s22, 7 }
  0x13   : > { %v535_v51 = vsub.s32 (!%p191_p9), 0, %v534_v46  ;;  %s907_s23 = scalar_lea.hbm (!%p191_p9), %s954_s5, %s635_s13 }
  0x15   : > { %s219_s30 = scalar_select %p218_p10, %s838_s22, 1 }
  0x16   : > { %s786_s22 = smov [#allocation2]  }
  0x17   : > { %s634_s6 = sshll.u32 %s219_s30, 3  ;;  %s715_s30 = sshll.u32 %s786_s22, 4  ;;  %s716_s30 = int_to_ptr.vmem [resolvable:$false] %s715_s30 }
  0x18   : > { %s222_s9 = scalar_lea.vmem %s949_s0, %s634_s6  ;;  %s717_s6 = scalar_lea.vmem %s716_s30, 256 }
  0x19   : > { %v870_v1 = vld [vmem:[%s222_s9] sm:$0xff]  ;;  %s784_s9 = smov 48  }
  0x1a   : > { %v230_v2 = vcombine.high %v870_v1, %v870_v1 }
  0x1c   : > { %623 = vmatprep.subr.msk.mxu0 %vm235_vm0, %v230_v2 }
  0x1d   : > { %624 = vmatpush1.msk.msra.mxu0 %vm235_vm0, %v870_v1 }
  0x1e   : > { %625 = vmatmul.mubr.msk.f32.vlgmr.msra.gmra.mrb[0].mxu0 %vm231_vm1, %v776_v3  ;;  %648 = vmatprep.subr.mxu0 %v775_v0 }
  0x1f   : > { %650 = vmatprep.mubr.msk.f32.mxu0 %vm780_vm2, %v775_v0  ;;  %649 = vmatpush3.msra.mxu0 %v226_v24 }
  0xf1   : > { %v306_v4 = vpop.f32.mrb[0].mxu0 }
  0xf2   : > { %312 = vrot.lane.b32.xlu0 %v306_v4, %s777_s10  ;;  %v308_v5 = vpop.f32.mrb[1].mxu0 }
  0xf6   : > { %317 = vrot.lane.b32.xlu0 %v308_v5, %s777_s10 }
 0x164   : > { %v313_v6 = vpop.permute.xlu0 %312 }
 0x165   : > { %v315_v7 = vadd.f32 %v313_v6, %v306_v4 }
 0x167   : > { %322 = vrot.lane.b32.xlu1 %v315_v7, %s778_s11 }
 0x168   : > { %v318_v8 = vpop.permute.xlu0 %317 }
 0x169   : > { %v320_v9 = vadd.f32 %v318_v8, %v308_v5 }
 0x16b   : > { %327 = vrot.lane.b32.xlu1 %v320_v9, %s778_s11 }
 0x1d9   : > { %v323_v14 = vpop.permute.xlu1 %322 }
 0x1da   : > { %v325_v15 = vadd.f32 %v323_v14, %v315_v7 }
 0x1dc   : > { %332 = vrot.lane.b32.xlu0 %v325_v15, %s781_s16 }
 0x1dd   : > { %v328_v16 = vpop.permute.xlu1 %327 }
 0x1de   : > { %v330_v17 = vadd.f32 %v328_v16, %v320_v9 }
 0x1e0   : > { %337 = vrot.lane.b32.xlu1 %v330_v17, %s781_s16 }
 0x24e   : > { %v333_v18 = vpop.permute.xlu0 %332 }
 0x24f   : > { %v335_v20 = vadd.f32 %v333_v18, %v325_v15 }
 0x252   : > { %v338_v19 = vpop.permute.xlu1 %337 }
 0x253   : > { %v340_v21 = vadd.f32 %v338_v19, %v330_v17 }
 0x255   : > { %v341_v22 = vadd.f32 %v340_v21, %v335_v20 }
 0x257   : > { %v342_v23 = vmul.f32 0.015625, %v341_v22 }
 0x259   : > { %646 = vmatmul.mubr.msk.f32.vlgmr.msra.gmra.mrb[0].mxu1 %vm343_vm3, %v342_v23 }
 0x32c   : > { %v413_v26 = vpop.f32.mrb[0].mxu1 }
 0x32d   : > { %v414_v27 = vadd.f32 %v413_v26, %v225_v25  ;;  %v647_v28 = vpop.f32.mrb[1].mxu1 }
 0x32f   : > { %v417_v29 = vmax.f32 %v414_v27, 0.0 }
 0x331   : > { %651 = vmatmul.mubr.msk.f32.vlgmr.msra.gmra.mrb[2].mxu0 %vm418_vm4, %v417_v29 }
 0x404   : > { %v488_v31 = vpop.f32.mrb[2].mxu0 }
 0x405   : > { %v489_v32 = vadd.f32 %v488_v31, %v227_v30  ;;  %v652_v33 = vpop.f32.mrb[3].mxu0 }
 0x407   : > { %v628_v34 = vmul.f32 -1.442695, %v489_v32 }
 0x409   : > { %707 = vpow2.f32 %v628_v34 }
 0x413   : > { %v708_v35 = vpop.eup %707 }
 0x414   : > { %v495_v36 = vadd.f32 1.0, %v708_v35 }
 0x416   : > { %709 = vrcp.f32 %v495_v36 }
 0x420   : > { %v710_v37 = vpop.eup %709 }
 0x421   : > { %502 = vrot.lane.b32.xlu1 %v710_v37, %s782_s7  ;;  %499 = vrot.lane.b32.xlu0 %v710_v37, %s783_s8 }
 0x425   : > { %508 = vrot.lane.b32.xlu1 %v710_v37, %s781_s16  ;;  %505 = vrot.lane.b32.xlu0 %v710_v37, %s784_s9 }
 0x429   : > { %514 = vrot.lane.b32.xlu1 %v710_v37, %s778_s11  ;;  %511 = vrot.lane.b32.xlu0 %v710_v37, %s785_s12  ;;  %s215_s11 = sand.u32 1, %s765_s19  }
 0x42a   : > { %s543_s25 = scalar_lea.sflag [#allocation3], %s215_s11 }
 0x42d   : > { %517 = vrot.lane.b32.xlu0 %v710_v37, %s777_s10  ;;  %s620_s10 = sshll.u32 %s215_s11, 3 }
 0x42e   : > { %s217_s14 = scalar_lea.vmem [#allocation2], %s620_s10 }
 0x42f   : > { %s557_s15 = sshll.u32 %s217_s14, 4  ;;  %s909_s15 = int_to_ptr.vmem [resolvable:$true] %s557_s15 }
 0x430   : > { %s711_s26 = scalar_lea.vmem %s909_s15, 128  ;;  %p718_p0 = scmp.lt.s32.totalorder %s909_s15, %s716_s30 }
 0x431   : > { %p712_p11 = scmp.ne.s32.totalorder %s909_s15, %s711_s26  ;;  %p719_p1 = scmp.lt.s32.totalorder %s717_s6, %s711_s26 }
 0x433   : > { %p713_p12 = pnand %p712_p11, %p855_p5  ;;  %p720_p2 = por %p719_p1, %p718_p0 }
 0x435   : > { %p714_p13 = pneg %p713_p12 }
 0x437   : > { %p721_p3 = pnand %p720_p2, %p714_p13 }
 0x493   : > { %v503_v38 = vpop.permute.xlu1 %502  ;;  %v500_v39 = vpop.permute.xlu0 %499 }
 0x494   : > { %v520_v40 = vsel %vm343_vm3, %v710_v37, %v500_v39 }
 0x495   : > { %v522_v43 = vsel %vm521_vm5, %v520_v40, %v503_v38 }
 0x497   : > { %v509_v42 = vpop.permute.xlu1 %508  ;;  %v506_v44 = vpop.permute.xlu0 %505 }
 0x498   : > { %v524_v45 = vsel %vm523_vm6, %v522_v43, %v506_v44 }
 0x499   : > { %v526_v47 = vsel %vm525_vm7, %v524_v45, %v509_v42 }
 0x49b   : > { %v512_v48 = vpop.permute.xlu0 %511  ;;  %v515_v49 = vpop.permute.xlu1 %514 }
 0x49c   : > { %v528_v50 = vsel %vm527_vm8, %v526_v47, %v512_v48 }
 0x49d   : > { %v530_v52 = vsel %vm529_vm9, %v528_v50, %v515_v49 }
 0x49f   : > { %v518_v53 = vpop.permute.xlu0 %517 }
 0x4a0   : > { %v532_v54 = vsel %vm531_vm10, %v530_v52, %v518_v53 }
 0x4a1   : > { %v536_v55 = vrot.slane %v532_v54, %v535_v51 }
 0x4a3   : > { %v538_v56 = vcombine.low %v536_v55, %v536_v55 }
 0x4a5   : > { %v540_v57 = vmul.f32 %v538_v56, %v870_v1 }
 0x4a7   : > { %541 = vst [vmem:[%s217_s14] sm:$0xff] %v540_v57 }
 0x4a8   : > { %724 = shalt.err (!%p721_p3)
}
 0x4a9   : > { %s725_s7 = scalar_lea.hbm %s907_s23, 128  ;;  %s729_s12 = scalar_lea.hbm %s954_s5, 256 }
 0x4aa   : > { %p726_p4 = scmp.ne.s32.totalorder %s907_s23, %s725_s7  ;;  %p730_p9 = scmp.lt.u32.totalorder %s907_s23, %s954_s5 }
 0x4ab   : > { %p731_p10 = scmp.lt.u32.totalorder %s729_s12, %s725_s7  ;;  %p733_p12 = scmp.lt.u32.totalorder %s725_s7, %s907_s23 }
 0x4ac   : > { %p727_p7 = pnand %p726_p4, %p855_p5 }
 0x4ad   : > { %p732_p11 = por %p731_p10, %p730_p9 }
 0x4ae   : > { %p728_p8 = pneg %p727_p7 }
 0x4af   : > { %p734_p13 = por %p733_p12, %p732_p11 }
 0x4b1   : > { %p735_p0 = pnand %p734_p13, %p728_p8 }
 0x4b3   : > { %738 = shalt.err (!%p735_p0)
}
 0x4b4   : > { %656 = dma.vmem_to_hbm [thread:$0]  (%p855_p5), %s909_s15, 128, %s907_s23, %s543_s25  }
 0x4b5 PF: > { %p662_p1 = scmp.ge.s32.totalorder %s773_s21, 2  ;;  %s569_s13 = sand.u32 1, %s761_s18  }
 0x4b6   : > { %s570_s14 = scalar_lea.sflag [#allocation3], %s569_s13 }
 0x4b7   : > { %p659_p2 = pnand %p662_p1, %p859_p6 }
 0x4b9   : > { %756 = dma.done.wait (!%p659_p2), %s570_s14, 128  }
 0x4ba   : > { %758 = vsyncadd (!%p659_p2), %s570_s14, 4294967168  ;;  %p15_p3 = scmp.ge.s32.totalorder %s842_s24, 4   ;;  %s957_s18 = smov %s765_s19 }
 0x4bb   : > { %s958_s19 = smov %s769_s20  ;;  %s959_s20 = smov %s853_s27 }
 0x4bc   : > { %s960_s21 = smov %s842_s24  ;;  %17 = sbr.rel (!%p15_p3) target bundleno = 3 (0x3), region = 75 }
 0x4c3   :  { %575 = vsyncpa [#allocation3], 1 }
 0x4c4   :  { %577 = vsyncpa [#allocation3 + $0x1], 1 }

</bundles_post_ra>
